<compile_context>
chip_gen: v7x
topology: tpu7x:2x2x1
jax: 0.10.0
libtpu: 0.0.40
codegen_flags: <defaults>
</compile_context>

<pallas_src>
import functools
import math

import jax
import jax.numpy as jnp
from jax.experimental import pallas as pl
from jax.experimental.pallas import tpu as pltpu


def _round_up(x, m):
    return (x + m - 1) // m * m


@functools.lru_cache(maxsize=None)
def _vmem_limit_bytes():
    """Generation-aware VMEM request: ~7/8 of per-core capacity, capped at 112 MiB.

    v7x (64 MiB/TC) -> 56 MiB; v5e/v6e (128 MiB) -> 112 MiB. Conservative 64 MiB
    capacity fallback if the hardware query is unavailable.
    """
    try:
        cap = int(pltpu.get_tpu_info().vmem_capacity_bytes)
    except Exception:
        cap = 64 * 1024 * 1024
    return min(cap * 7 // 8, 112 * 1024 * 1024)


def _choose_col_tile(hp, kc, w_itemsize):
    """Largest hidden-column tile whose double-buffered weight slab fits ~half the budget."""
    budget = int(_vmem_limit_bytes() * 0.85)
    cands = [hp] + [t for t in (1024, 512, 256, 128) if t < hp and hp % t == 0]
    for tn in cands:
        if 2 * kc * 4 * tn * w_itemsize <= budget // 2:
            return tn
    return cands[-1]


def _choose_batch_tile(batch, in_dim, hidden, tn, w_itemsize, a_itemsize):
    """Largest batch tile fitting the remaining budget, then shrunk to minimize padding."""
    budget = int(_vmem_limit_bytes() * 0.85)
    fixed = 2 * (in_dim + hidden) * 4 * tn * w_itemsize + 2 * 4 * tn * 4  # weights + bias
    per_row = (2 * (in_dim + hidden) * a_itemsize   # x + h blocks (double-buffered)
               + 2 * tn * 4                         # c block
               + 2 * 2 * tn * 4                     # h_out + c_out blocks
               + 3 * 4 * tn * 4)                    # pre-activations + live gate temps (f32)
    tb_max = 8
    for tb in (1024, 512, 256, 128, 64, 32, 16, 8):
        if fixed + tb * per_row <= budget:
            tb_max = tb
            break
    b8 = _round_up(batch, 8)
    tb_max = min(tb_max, b8)
    nb = -(-batch // tb_max)
    tb = _round_up(-(-batch // nb), 8)   # e.g. B=520: nb=2 -> TB=264 (8 padded rows, not 504)
    return tb, nb


def prepare_meta_lstm_params(wi, wh, bi, bh, *, compute_dtype=jnp.float32):
    """One-time re-packing of the PyTorch-layout MetaLSTMCell parameters.

    wi: (4H, I), wh: (4H, H), bi/bh: (4H,)  in gate order [i|f|o|g].

    Returns (w_x, w_h, b, col_tile):
      w_x: (I, 4*Hp)  column-tile-interleaved, gate-lane-contiguous input weights
      w_h: (H, 4*Hp)  same layout for the hidden weights
      b  : (1, 4*Hp)  folded bias (bi + bh), f32, same layout
      col_tile: the hidden-column tile TN the layout was built for (static int).

    Packed column index = t*(4*TN) + g*TN + k  for hidden unit n = t*TN + k of
    gate g, so one wide-N matmul per grid step yields all four gates and the
    per-gate slices sit at lane offsets that are multiples of TN (TN % 128 == 0).
    """
    four_h, in_dim = wi.shape
    hidden = wh.shape[1]
    assert four_h == 4 * hidden and wh.shape == (4 * hidden, hidden)
    hp = _round_up(hidden, 128)
    w_itemsize = jnp.dtype(compute_dtype).itemsize
    tn = _choose_col_tile(hp, in_dim + hidden, w_itemsize)
    nt = hp // tn

    def pack_w(w, k):
        wg = w.reshape(4, hidden, k)                           # (gate, H, K)
        wg = jnp.pad(wg, ((0, 0), (0, hp - hidden), (0, 0)))   # (gate, Hp, K)
        wg = wg.reshape(4, nt, tn, k)
        wg = jnp.transpose(wg, (3, 1, 0, 2))                   # (K, tile, gate, tn)
        return wg.reshape(k, nt * 4 * tn).astype(compute_dtype)

    w_x = pack_w(wi, in_dim)
    w_h = pack_w(wh, hidden)

    b = (bi + bh).astype(jnp.float32).reshape(4, hidden)
    b = jnp.pad(b, ((0, 0), (0, hp - hidden)))                 # (4, Hp)
    b = b.reshape(4, nt, tn)
    b = jnp.transpose(b, (1, 0, 2)).reshape(1, nt * 4 * tn)    # (1, 4*Hp)
    return w_x, w_h, b, tn


def _sigmoid(z):
    # tanh-form sigmoid: one EUP transcendental instead of exp + divide.
    return 0.5 * jnp.tanh(0.5 * z) + 0.5


def _meta_lstm_kernel(x_ref, h_ref, c_ref, wx_ref, wh_ref, b_ref,
                      h_out_ref, c_out_ref, *, tn):
    """One (column-tile j, batch-tile i) step.

    x_ref : (TB, I)        input activations
    h_ref : (TB, H)        previous hidden state
    c_ref : (TB, TN)       previous cell state (f32), this column tile
    wx_ref: (I, 4*TN)      packed input weights, this column tile (all gates)
    wh_ref: (H, 4*TN)      packed hidden weights, this column tile (all gates)
    b_ref : (1, 4*TN)      folded bias, f32
    h_out_ref / c_out_ref : (TB, TN) f32
    """
    # One wide-N matmul per operand: all four gates for this column tile.
    pre = jnp.dot(x_ref[...], wx_ref[...], preferred_element_type=jnp.float32)
    pre = pre + jnp.dot(h_ref[...], wh_ref[...], preferred_element_type=jnp.float32)
    pre = pre + b_ref[...]

    # Gate slices are lane-aligned (offsets are multiples of TN = k*128).
    # Incremental c_t accumulation keeps only ~3 (TB, TN) f32 temporaries live.
    c_t = _sigmoid(pre[:, 0 * tn:1 * tn]) * jnp.tanh(pre[:, 3 * tn:4 * tn])   # i * g
    c_t = c_t + _sigmoid(pre[:, 1 * tn:2 * tn]) * c_ref[...]                  # + f * c_prev
    h_t = _sigmoid(pre[:, 2 * tn:3 * tn]) * jnp.tanh(c_t)                     # o * tanh(c)

    h_out_ref[...] = h_t.astype(h_out_ref.dtype)
    c_out_ref[...] = c_t.astype(c_out_ref.dtype)


@functools.partial(jax.jit, static_argnames=("hidden_size", "col_tile"))
def meta_lstm_cell(x, h, c, w_x, w_h, b, *, hidden_size, col_tile):
    """Pallas MetaLSTMCell forward.

    x: (B, I); h, c: (B, H) f32; w_x/w_h/b/col_tile from prepare_meta_lstm_params.
    Returns (h_t, c_t), each (B, H) float32.
    """
    H = hidden_size
    B, I = x.shape
    TN = col_tile
    Hp = w_x.shape[1] // 4
    assert w_x.shape == (I, 4 * Hp) and w_h.shape == (H, 4 * Hp)
    assert h.shape == (B, H) and c.shape == (B, H)
    assert Hp % TN == 0 and TN % 128 == 0
    nh = Hp // TN

    w_dt = w_x.dtype
    wsz = jnp.dtype(w_dt).itemsize
    TB, nb = _choose_batch_tile(B, I, H, TN, wsz, wsz)
    B_pad = nb * TB

    # Activation-side glue only: no [x|h] concat through HBM, no weight reshapes.
    x_p = jnp.pad(x.astype(w_dt), ((0, B_pad - B), (0, 0)))
    h_p = jnp.pad(h.astype(w_dt), ((0, B_pad - B), (0, 0)))
    c_p = jnp.pad(c.astype(jnp.float32), ((0, B_pad - B), (0, Hp - H)))

    cost = pl.CostEstimate(
        flops=2 * B_pad * (I + H) * 4 * Hp,
        transcendentals=5 * B_pad * Hp,
        bytes_accessed=(x_p.size * wsz + h_p.size * wsz + c_p.size * 4
                        + w_x.size * wsz + w_h.size * wsz + b.size * 4
                        + 2 * B_pad * Hp * 4),
    )

    # Grid: column tiles OUTER, batch tiles INNER -> the weight block index is
    # constant across the inner loop, so Pallas fetches the weight slab only nh
    # times total (not nb*nh). On megacore, shard the column axis so each core
    # streams only half the weight columns; shard batch only when nh == 1.
    dim_sem = ("parallel", "arbitrary") if nh > 1 else ("arbitrary", "parallel")

    h_full, c_full = pl.pallas_call(
        functools.partial(_meta_lstm_kernel, tn=TN),
        out_shape=(
            jax.ShapeDtypeStruct((B_pad, Hp), jnp.float32),
            jax.ShapeDtypeStruct((B_pad, Hp), jnp.float32),
        ),
        grid=(nh, nb),
        in_specs=[
            pl.BlockSpec((TB, I), lambda j, i: (i, 0)),          # x
            pl.BlockSpec((TB, H), lambda j, i: (i, 0)),          # h
            pl.BlockSpec((TB, TN), lambda j, i: (i, j)),         # c (prev cell state)
            pl.BlockSpec((I, 4 * TN), lambda j, i: (0, j)),      # w_x (resident across i)
            pl.BlockSpec((H, 4 * TN), lambda j, i: (0, j)),      # w_h (resident across i)
            pl.BlockSpec((1, 4 * TN), lambda j, i: (0, j)),      # bias (resident across i)
        ],
        out_specs=(
            pl.BlockSpec((TB, TN), lambda j, i: (i, j)),
            pl.BlockSpec((TB, TN), lambda j, i: (i, j)),
        ),
        compiler_params=pltpu.CompilerParams(
            dimension_semantics=dim_sem,
            vmem_limit_bytes=_vmem_limit_bytes(),
        ),
        cost_estimate=cost,
    )(x_p, h_p, c_p, w_x, w_h, b)

    return h_full[:B, :H], c_full[:B, :H]


def _reference(x, h, c, wi, wh, bi, bh):
    """Pure-JAX reference mirroring the PyTorch forward exactly."""
    H = h.shape[1]
    preact = x @ wi.T + bi + h @ wh.T + bh
    i_t = jax.nn.sigmoid(preact[:, :H])
    f_t = jax.nn.sigmoid(preact[:, H:2 * H])
    o_t = jax.nn.sigmoid(preact[:, 2 * H:3 * H])
    g_t = jnp.tanh(preact[:, 3 * H:])
    c_t = c * f_t + i_t * g_t
    h_t = o_t * jnp.tanh(c_t)
    return h_t, c_t


if __name__ == "__main__":
    B, I, H = 8, 32, 32

    key = jax.random.PRNGKey(0)
    kx, kh, kc, kwi, kwh, kbi, kbh = jax.random.split(key, 7)

    # Deterministic parameter init mimicking reset_parameters(): U(-std, std)
    std = 1.0 / math.sqrt(H)
    wi = jax.random.uniform(kwi, (4 * H, I), jnp.float32, -std, std)
    wh = jax.random.uniform(kwh, (4 * H, H), jnp.float32, -std, std)
    bi = jax.random.uniform(kbi, (4 * H,), jnp.float32, -std, std)
    bh = jax.random.uniform(kbh, (4 * H,), jnp.float32, -std, std)

    x = jax.random.normal(kx, (B, I), jnp.float32)
    h = jax.random.normal(kh, (B, H), jnp.float32)
    c = jax.random.normal(kc, (B, H), jnp.float32)

    h_ref, c_ref = _reference(x, h, c, wi, wh, bi, bh)

    # f32 weight path: tight correctness check.
    w_x, w_h, b, tn = prepare_meta_lstm_params(wi, wh, bi, bh, compute_dtype=jnp.float32)
    h_t, c_t = meta_lstm_cell(x, h, c, w_x, w_h, b, hidden_size=H, col_tile=tn)
    jax.block_until_ready((h_t, c_t))
    assert h_t.shape == (B, H) and c_t.shape == (B, H)
    assert jnp.allclose(h_t, h_ref, atol=1e-4, rtol=1e-4)
    assert jnp.allclose(c_t, c_ref, atol=1e-4, rtol=1e-4)

    # bf16 weight/activation HBM storage (halves weight traffic): loose check.
    # Note: h is cast to bf16 before the matmul; over long recurrences this
    # loses hidden-state precision — keep f32 weights if chaining many steps.
    w_xb, w_hb, b_f, tnb = prepare_meta_lstm_params(wi, wh, bi, bh, compute_dtype=jnp.bfloat16)
    h_b, c_b = meta_lstm_cell(x, h, c, w_xb, w_hb, b_f, hidden_size=H, col_tile=tnb)
    jax.block_until_ready((h_b, c_b))
    assert jnp.allclose(h_b, h_ref, atol=1e-1, rtol=1e-1)
    assert jnp.allclose(c_b, c_ref, atol=1e-1, rtol=1e-1)

    print("KERNEL_OK")
</pallas_src>

<mosaic_0001>
module attributes {stable_mosaic.version = 11 : i64} {
  func.func @_meta_lstm_kernel(%arg0: i32, %arg1: i32, %arg2: memref<8x32xf32, #tpu.memory_space<vmem>>, %arg3: memref<8x32xf32, #tpu.memory_space<vmem>>, %arg4: memref<8x128xf32, #tpu.memory_space<vmem>>, %arg5: memref<32x512xf32, #tpu.memory_space<vmem>>, %arg6: memref<32x512xf32, #tpu.memory_space<vmem>>, %arg7: memref<1x512xf32, #tpu.memory_space<vmem>>, %arg8: memref<8x128xf32, #tpu.memory_space<vmem>>, %arg9: memref<8x128xf32, #tpu.memory_space<vmem>>) attributes {dimension_semantics = [#tpu.dimension_semantics<arbitrary>, #tpu.dimension_semantics<parallel>], iteration_bounds = array<i64: 1, 1>, scalar_prefetch = 0 : i64, scratch_operands = 0 : i64, tpu.core_type = #tpu.core_type<tc>, window_params = [{transform_indices = @transform_0, window_bounds = array<i64: 8, 32>}, {transform_indices = @transform_1, window_bounds = array<i64: 8, 32>}, {transform_indices = @transform_2, window_bounds = array<i64: 8, 128>}, {transform_indices = @transform_3, window_bounds = array<i64: 32, 512>}, {transform_indices = @transform_4, window_bounds = array<i64: 32, 512>}, {transform_indices = @transform_5, window_bounds = array<i64: 1, 512>}, {transform_indices = @transform_6, window_bounds = array<i64: 8, 128>}, {transform_indices = @transform_7, window_bounds = array<i64: 8, 128>}]} {
    %c0 = arith.constant 0 : index
    %c0_0 = arith.constant 0 : index
    %0 = vector.load %arg2[%c0, %c0_0] : memref<8x32xf32, #tpu.memory_space<vmem>>, vector<8x32xf32>
    %c0_1 = arith.constant 0 : index
    %c0_2 = arith.constant 0 : index
    %1 = vector.load %arg5[%c0_1, %c0_2] : memref<32x512xf32, #tpu.memory_space<vmem>>, vector<32x512xf32>
    %cst = arith.constant dense<0.000000e+00> : vector<8x512xf32>
    %2 = tpu.matmul %0, %1, %cst {dimension_numbers = #tpu.dot_dimension_numbers<[1], [0], [0], [1], [0, 0, 1, 1], [], []>} : vector<8x32xf32>, vector<32x512xf32>, vector<8x512xf32> -> vector<8x512xf32>
    %c0_3 = arith.constant 0 : index
    %c0_4 = arith.constant 0 : index
    %3 = vector.load %arg3[%c0_3, %c0_4] : memref<8x32xf32, #tpu.memory_space<vmem>>, vector<8x32xf32>
    %c0_5 = arith.constant 0 : index
    %c0_6 = arith.constant 0 : index
    %4 = vector.load %arg6[%c0_5, %c0_6] : memref<32x512xf32, #tpu.memory_space<vmem>>, vector<32x512xf32>
    %cst_7 = arith.constant dense<0.000000e+00> : vector<8x512xf32>
    %5 = tpu.matmul %3, %4, %cst_7 {dimension_numbers = #tpu.dot_dimension_numbers<[1], [0], [0], [1], [0, 0, 1, 1], [], []>} : vector<8x32xf32>, vector<32x512xf32>, vector<8x512xf32> -> vector<8x512xf32>
    %6 = arith.addf %2, %5 : vector<8x512xf32>
    %c0_8 = arith.constant 0 : index
    %c0_9 = arith.constant 0 : index
    %7 = vector.load %arg7[%c0_8, %c0_9] : memref<1x512xf32, #tpu.memory_space<vmem>>, vector<1x512xf32>
    %8 = vector.broadcast %7 : vector<1x512xf32> to vector<8x512xf32>
    %9 = arith.addf %6, %8 : vector<8x512xf32>
    %10 = vector.extract_strided_slice %9 {offsets = [0, 0], sizes = [8, 128], strides = [1, 1]} : vector<8x512xf32> to vector<8x128xf32>
    %cst_10 = arith.constant 5.000000e-01 : f32
    %11 = vector.broadcast %cst_10 : f32 to vector<8x128xf32>
    %12 = arith.mulf %11, %10 : vector<8x128xf32>
    %13 = math.tanh %12 : vector<8x128xf32>
    %cst_11 = arith.constant 5.000000e-01 : f32
    %14 = vector.broadcast %cst_11 : f32 to vector<8x128xf32>
    %15 = arith.mulf %14, %13 : vector<8x128xf32>
    %cst_12 = arith.constant 5.000000e-01 : f32
    %16 = vector.broadcast %cst_12 : f32 to vector<8x128xf32>
    %17 = arith.addf %15, %16 : vector<8x128xf32>
    %18 = vector.extract_strided_slice %9 {offsets = [0, 384], sizes = [8, 128], strides = [1, 1]} : vector<8x512xf32> to vector<8x128xf32>
    %19 = math.tanh %18 : vector<8x128xf32>
    %20 = arith.mulf %17, %19 : vector<8x128xf32>
    %21 = vector.extract_strided_slice %9 {offsets = [0, 128], sizes = [8, 128], strides = [1, 1]} : vector<8x512xf32> to vector<8x128xf32>
    %cst_13 = arith.constant 5.000000e-01 : f32
    %22 = vector.broadcast %cst_13 : f32 to vector<8x128xf32>
    %23 = arith.mulf %22, %21 : vector<8x128xf32>
    %24 = math.tanh %23 : vector<8x128xf32>
    %cst_14 = arith.constant 5.000000e-01 : f32
    %25 = vector.broadcast %cst_14 : f32 to vector<8x128xf32>
    %26 = arith.mulf %25, %24 : vector<8x128xf32>
    %cst_15 = arith.constant 5.000000e-01 : f32
    %27 = vector.broadcast %cst_15 : f32 to vector<8x128xf32>
    %28 = arith.addf %26, %27 : vector<8x128xf32>
    %c0_16 = arith.constant 0 : index
    %c0_17 = arith.constant 0 : index
    %29 = vector.load %arg4[%c0_16, %c0_17] : memref<8x128xf32, #tpu.memory_space<vmem>>, vector<8x128xf32>
    %30 = arith.mulf %28, %29 : vector<8x128xf32>
    %31 = arith.addf %20, %30 : vector<8x128xf32>
    %32 = vector.extract_strided_slice %9 {offsets = [0, 256], sizes = [8, 128], strides = [1, 1]} : vector<8x512xf32> to vector<8x128xf32>
    %cst_18 = arith.constant 5.000000e-01 : f32
    %33 = vector.broadcast %cst_18 : f32 to vector<8x128xf32>
    %34 = arith.mulf %33, %32 : vector<8x128xf32>
    %35 = math.tanh %34 : vector<8x128xf32>
    %cst_19 = arith.constant 5.000000e-01 : f32
    %36 = vector.broadcast %cst_19 : f32 to vector<8x128xf32>
    %37 = arith.mulf %36, %35 : vector<8x128xf32>
    %cst_20 = arith.constant 5.000000e-01 : f32
    %38 = vector.broadcast %cst_20 : f32 to vector<8x128xf32>
    %39 = arith.addf %37, %38 : vector<8x128xf32>
    %40 = math.tanh %31 : vector<8x128xf32>
    %41 = arith.mulf %39, %40 : vector<8x128xf32>
    %c0_21 = arith.constant 0 : index
    %c0_22 = arith.constant 0 : index
    %42 = vector.load %arg8[%c0_21, %c0_22] : memref<8x128xf32, #tpu.memory_space<vmem>>, vector<8x128xf32>
    tpu.vector_store %arg8[%c0_21, %c0_22], %41 {strides = array<i32>} : memref<8x128xf32, #tpu.memory_space<vmem>>, vector<8x128xf32>,
    %c0_23 = arith.constant 0 : index
    %c0_24 = arith.constant 0 : index
    %43 = vector.load %arg9[%c0_23, %c0_24] : memref<8x128xf32, #tpu.memory_space<vmem>>, vector<8x128xf32>
    tpu.vector_store %arg9[%c0_23, %c0_24], %31 {strides = array<i32>} : memref<8x128xf32, #tpu.memory_space<vmem>>, vector<8x128xf32>,
    return
  }
  func.func @transform_0(%arg0: i32, %arg1: i32) -> (i32, i32) {
    %c0_i32 = arith.constant 0 : i32
    %c0_i32_0 = arith.constant 0 : i32
    return %arg1, %c0_i32 : i32, i32
  }
  func.func @transform_1(%arg0: i32, %arg1: i32) -> (i32, i32) {
    %c0_i32 = arith.constant 0 : i32
    %c0_i32_0 = arith.constant 0 : i32
    return %arg1, %c0_i32 : i32, i32
  }
  func.func @transform_2(%arg0: i32, %arg1: i32) -> (i32, i32) {
    %c0_i32 = arith.constant 0 : i32
    return %arg1, %arg0 : i32, i32
  }
  func.func @transform_3(%arg0: i32, %arg1: i32) -> (i32, i32) {
    %c0_i32 = arith.constant 0 : i32
    %c0_i32_0 = arith.constant 0 : i32
    return %c0_i32, %arg0 : i32, i32
  }
  func.func @transform_4(%arg0: i32, %arg1: i32) -> (i32, i32) {
    %c0_i32 = arith.constant 0 : i32
    %c0_i32_0 = arith.constant 0 : i32
    return %c0_i32, %arg0 : i32, i32
  }
  func.func @transform_5(%arg0: i32, %arg1: i32) -> (i32, i32) {
    %c0_i32 = arith.constant 0 : i32
    %c0_i32_0 = arith.constant 0 : i32
    return %c0_i32, %arg0 : i32, i32
  }
  func.func @transform_6(%arg0: i32, %arg1: i32) -> (i32, i32) {
    %c0_i32 = arith.constant 0 : i32
    return %arg1, %arg0 : i32, i32
  }
  func.func @transform_7(%arg0: i32, %arg1: i32) -> (i32, i32) {
    %c0_i32 = arith.constant 0 : i32
    return %arg1, %arg0 : i32, i32
  }
}

</mosaic_0001>

<bundles_post_ra>
// kernel: meta_lstm_cell.1
= control target key start
LH: loop header
LB: loop body
LE: loop exit
PB: predicated region body
PF: predicated region fallthrough
CT: control target
= control target key end

     0   :  { %13 = vsyncpa [#allocation3], 0  ;;  %s725_s0 = inlined_call_operand.vmem [shape: f32[8,32], index: 0, kind: input, shape index: {}]   ;;  %s726_s1 = inlined_call_operand.vmem [shape: f32[8,32], index: 1, kind: input, shape index: {}]   ;;  %s727_s2 = inlined_call_operand.vmem [shape: f32[8,128], index: 2, kind: input, shape index: {}]   ;;  %s728_s3 = inlined_call_operand.hbm [shape: f32[32,512], index: 3, kind: input, shape index: {}]   ;;  %s729_s4 = inlined_call_operand.hbm [shape: f32[32,512], index: 4, kind: input, shape index: {}]   ;;  %s730_s5 = inlined_call_operand.vmem [shape: f32[1,512], index: 5, kind: input, shape index: {}]   ;;  %s731_s6 = inlined_call_operand.hbm [shape: f32[8,128], index: 6, kind: output, shape index: {0}]   ;;  %s732_s7 = inlined_call_operand.hbm [shape: f32[8,128], index: 7, kind: output, shape index: {1}]  }
   0x1   :  { %14 = vsyncpa [#allocation6], 0 }
   0x2   :  { %15 = vsyncpa [#allocation4], 0 }
   0x3   :  { %16 = vsyncpa [#allocation9], 0  ;;  %s610_s24 = smov [#allocation2]   ;;  %s514_s28 = scalar_lea.hbm %s728_s3, 2048 }
   0x4   :  { %s28_s25 = sshll.u32 %s610_s24, 4  ;;  %p515_p0 = scmp.ne.s32.totalorder %s728_s3, %s514_s28  ;;  %s29_s25 = int_to_ptr.vmem [resolvable:$true] %s28_s25 }
   0x5   :  { %p518_p1 = scmp.lt.u32.totalorder %s514_s28, %s728_s3 }
   0x7   :  { %p520_p2 = pnand %p518_p1, %p515_p0 }
   0x9   :  { %523 = shalt.err (!%p520_p2)
}
   0xa   :  { %s524_s10 = scalar_lea.vmem %s29_s25, 2048  ;;  %p529_p4 = scmp.lt.s32.totalorder %s29_s25, %s29_s25 }
   0xb   :  { %p525_p3 = scmp.ne.s32.totalorder %s29_s25, %s524_s10  ;;  %p530_p5 = scmp.lt.s32.totalorder %s524_s10, %s524_s10 }
   0xd   :  { %p531_p6 = por %p530_p5, %p529_p4 }
   0xf   :  { %p532_p7 = pnand %p531_p6, %p525_p3 }
  0x11   :  { %535 = shalt.err (!%p532_p7)
}
  0x12   :  { %s611_s11 = smov 512   ;;  %s612_s12 = smov 32  }
  0x13   :  { %34 = dma.hbm_to_vmem [thread:$0]  %s728_s3, 2048, %s29_s25, [#allocation3], %s611_s11, %s611_s11, %s612_s12  }
  0x14   :  { %s613_s15 = smov [#allocation5]   ;;  %s536_s19 = scalar_lea.hbm %s729_s4, 2048 }
  0x15   :  { %s40_s16 = sshll.u32 %s613_s15, 4  ;;  %p537_p8 = scmp.ne.s32.totalorder %s729_s4, %s536_s19  ;;  %s41_s16 = int_to_ptr.vmem [resolvable:$true] %s40_s16 }
  0x16   :  { %p540_p9 = scmp.lt.u32.totalorder %s536_s19, %s729_s4 }
  0x18   :  { %p542_p10 = pnand %p540_p9, %p537_p8 }
  0x1a   :  { %545 = shalt.err (!%p542_p10)
}
  0x1b   :  { %s546_s24 = scalar_lea.vmem %s41_s16, 2048  ;;  %p551_p12 = scmp.lt.s32.totalorder %s41_s16, %s41_s16 }
  0x1c   :  { %p547_p11 = scmp.ne.s32.totalorder %s41_s16, %s546_s24  ;;  %p552_p13 = scmp.lt.s32.totalorder %s546_s24, %s546_s24 }
  0x1e   :  { %p553_p0 = por %p552_p13, %p551_p12 }
  0x20   :  { %p554_p1 = pnand %p553_p0, %p547_p11 }
  0x22   :  { %557 = shalt.err (!%p554_p1)
}
  0x23   :  { %46 = dma.hbm_to_vmem [thread:$0]  %s729_s4, 2048, %s41_s16, [#allocation6], %s611_s11, %s611_s11, %s612_s12  }
  0x24   :  { %602 = dma.done.wait [#allocation3], 2048  }
  0x25   :  { %603 = vsyncadd [#allocation3], 4294965248 }
  0x26   :  { %604 = dma.done.wait [#allocation6], 2048  }
  0x27   :  { %605 = vsyncadd [#allocation6], 4294965248  ;;  %v614_v0 = vmov 0.0   ;;  %v74_v1 = vld [vmem:[#allocation5 + $0x8] sm:$0xff]  ;;  %v76_v3 = vld [vmem:[#allocation5 + $0x18] sm:$0xff]  ;;  %vm89_vm0 = vcmask 261120   ;;  %v382_v51 = vlaneseq }
  0x28   :  { %157 = vmatprep.mubr.f32.mxu0 %v614_v0  ;;  %228 = vmatprep.mubr.f32.mxu1 %v614_v0  ;;  %v78_v2 = vld [vmem:[#allocation5 + $0x28] sm:$0xff]  ;;  %v80_v5 = vld [vmem:[#allocation5 + $0x38] sm:$0xff]  ;;  %v73_v6 = vld [vmem:[#allocation5] sm:$0xff]  ;;  %s615_s30 = smov [#allocation8]  }
  0x29   :  { %v461_v4 = vpack.c.bf16 %v78_v2, %v74_v1  ;;  %v77_v7 = vld [vmem:[#allocation5 + $0x20] sm:$0xff]  ;;  %v469_v8 = vpack.c.bf16 %v80_v5, %v76_v3  ;;  %v75_v10 = vld [vmem:[#allocation5 + $0x10] sm:$0xff]  ;;  %v82_v12 = vld [vmem:[#allocation5 + $0x48] sm:$0xff]  ;;  %v383_v52 = vshrl.u32 %v382_v51, 7  ;;  %s443_s8 = sshll.u32 %s615_s30, 4  ;;  %s444_s8 = int_to_ptr.vmem [resolvable:$true] %s443_s8 }
  0x2a   :  { %v463_v9 = vpack.c.bf16 %v77_v7, %v73_v6  ;;  %v79_v11 = vld [vmem:[#allocation5 + $0x30] sm:$0xff]  ;;  %v86_v14 = vld [vmem:[#allocation5 + $0x68] sm:$0xff]  ;;  %v84_v15 = vld [vmem:[#allocation5 + $0x58] sm:$0xff]  ;;  %s558_s9 = scalar_lea.vmem %s444_s8, 128  ;;  %p563_p3 = scmp.lt.s32.totalorder %s444_s8, %s444_s8 }
  0x2b   :  { %462 = vmatprep.subr.bf16.mxu0 %v461_v4  ;;  %v471_v13 = vpack.c.bf16 %v79_v11, %v75_v10  ;;  %v88_v16 = vld [vmem:[#allocation5 + $0x78] sm:$0xff]  ;;  %470 = vmatprep.subr.bf16.mxu1 %v469_v8  ;;  %v465_v17 = vpack.c.bf16 %v86_v14, %v82_v12  ;;  %v81_v19 = vld [vmem:[#allocation5 + $0x40] sm:$0xff]  ;;  %v83_v21 = vld [vmem:[#allocation5 + $0x50] sm:$0xff]  ;;  %v384_v53 = vsub.s32 0, %v383_v52  ;;  %v388_v55 = vsub.s32 1, %v383_v52  ;;  %p559_p2 = scmp.ne.s32.totalorder %s444_s8, %s558_s9  ;;  %p564_p4 = scmp.lt.s32.totalorder %s558_s9, %s558_s9 }
  0x2c   :  { %464 = vmatpush1.bf16.msra.mxu0 %v463_v9  ;;  %v473_v18 = vpack.c.bf16 %v88_v16, %v84_v15  ;;  %v85_v20 = vld [vmem:[#allocation5 + $0x60] sm:$0xff]  ;;  %v87_v23 = vld [vmem:[#allocation5 + $0x70] sm:$0xff]  ;;  %v57_v24 = vld [vmem:[#allocation2 + $0x8] sm:$0xff]  ;;  %v396_v57 = vsub.s32 3, %v383_v52 }
  0x2d   :  { %472 = vmatpush1.bf16.msra.mxu1 %v471_v13  ;;  %v467_v22 = vpack.c.bf16 %v85_v20, %v81_v19  ;;  %466 = vmatprep.subr.bf16.mxu0 %v465_v17  ;;  %v475_v25 = vpack.c.bf16 %v87_v23, %v83_v21  ;;  %v72_v26 = vld [vmem:[%s726_s1] sm:$0xff]  ;;  %v61_v27 = vld [vmem:[#allocation2 + $0x28] sm:$0xff]  ;;  %v59_v28 = vld [vmem:[#allocation2 + $0x18] sm:$0xff]  ;;  %p565_p5 = por %p564_p4, %p563_p3 }
  0x2e   :  { %474 = vmatprep.subr.bf16.mxu1 %v473_v18  ;;  %v63_v29 = vld [vmem:[#allocation2 + $0x38] sm:$0xff]  ;;  %v477_v30 = vpack.c.bf16 %v61_v27, %v57_v24  ;;  %v56_v32 = vld [vmem:[#allocation2] sm:$0xff]  ;;  %v58_v34 = vld [vmem:[#allocation2 + $0x10] sm:$0xff] }
  0x2f   :  { %v485_v31 = vpack.c.bf16 %v63_v29, %v59_v28  ;;  %v60_v33 = vld [vmem:[#allocation2 + $0x20] sm:$0xff]  ;;  %v62_v36 = vld [vmem:[#allocation2 + $0x30] sm:$0xff]  ;;  %v65_v37 = vld [vmem:[#allocation2 + $0x48] sm:$0xff]  ;;  %p566_p6 = pnand %p565_p5, %p559_p2 }
  0x30   :  { %468 = vmatpush1.bf16.msra.mxu0 %v467_v22  ;;  %v479_v35 = vpack.c.bf16 %v60_v33, %v56_v32  ;;  %v69_v38 = vld [vmem:[#allocation2 + $0x68] sm:$0xff]  ;;  %v487_v39 = vpack.c.bf16 %v62_v36, %v58_v34  ;;  %v67_v41 = vld [vmem:[#allocation2 + $0x58] sm:$0xff]  ;;  %v64_v43 = vld [vmem:[#allocation2 + $0x40] sm:$0xff] }
  0x31   :  { %476 = vmatpush1.bf16.msra.mxu1 %v475_v25  ;;  %478 = vmatprep.subr.bf16.mxu0 %v477_v30  ;;  %v481_v40 = vpack.c.bf16 %v69_v38, %v65_v37  ;;  %v71_v42 = vld [vmem:[#allocation2 + $0x78] sm:$0xff]  ;;  %v68_v45 = vld [vmem:[#allocation2 + $0x60] sm:$0xff]  ;;  %v66_v46 = vld [vmem:[#allocation2 + $0x50] sm:$0xff] }
  0x32   :  { %486 = vmatprep.subr.bf16.mxu1 %v485_v31  ;;  %v489_v44 = vpack.c.bf16 %v71_v42, %v67_v41  ;;  %v70_v47 = vld [vmem:[#allocation2 + $0x70] sm:$0xff]  ;;  %v483_v48 = vpack.c.bf16 %v68_v45, %v64_v43  ;;  %v55_v50 = vld [vmem:[%s725_s0] sm:$0xff] }
  0x33   :  { %457 = vmatmul.mubr.msk.f32.vlgmr.msra.gmra.mrb[0].mxu0 %vm89_vm0, %v72_v26  ;;  %v491_v49 = vpack.c.bf16 %v70_v47, %v66_v46  ;;  %v380_v54 = vld [vmem:[%s730_s5] sm:$0xf] }
  0x34   :  { %458 = vmatmul.mubr.msk.f32.vlgmr.msra.gmra.mrb[0].mxu1 %vm89_vm0, %v72_v26  ;;  %480 = vmatpush1.bf16.msra.mxu0 %v479_v35  ;;  %v385_v56 = vrot.slane %v380_v54, %v384_v53  ;;  %v389_v58 = vrot.slane %v380_v54, %v388_v55  ;;  %v397_v63 = vrot.slane %v380_v54, %v396_v57  ;;  %v416_v15 = vld [vmem:[%s727_s2] sm:$0xff] }
  0x35   :  { %488 = vmatpush1.bf16.msra.mxu1 %v487_v39  ;;  %482 = vmatprep.subr.bf16.mxu0 %v481_v40 }
  0x36   :  { %490 = vmatprep.subr.bf16.mxu1 %v489_v44  ;;  %302 = vmatprep.mubr.f32.mxu0 %v614_v0 }
  0x37   :  { %373 = vmatprep.mubr.f32.mxu1 %v614_v0  ;;  %v392_v0 = vsub.s32 2, %v383_v52 }
  0x38   :  { %484 = vmatpush1.bf16.msra.mxu0 %v483_v48 }
  0x39   :  { %492 = vmatpush1.bf16.msra.mxu1 %v491_v49  ;;  %v393_v6 = vrot.slane %v380_v54, %v392_v0 }
  0x3b   :  { %459 = vmatmul.mubr.msk.f32.vlgmr.msra.gmra.mrb[0].mxu0 %vm89_vm0, %v55_v50 }
  0x3c   :  { %460 = vmatmul.mubr.msk.f32.vlgmr.msra.gmra.mrb[0].mxu1 %vm89_vm0, %v55_v50 }
 0x10e   :  { %v304_v59 = vpop.f32.mrb[0].mxu0 }
 0x10f   :  { %v402_v60 = vadd.f32 %v385_v56, %v304_v59  ;;  %v375_v61 = vpop.f32.mrb[0].mxu1  ;;  %v306_v62 = vpop.f32.mrb[1].mxu0 }
 0x110   :  { %v403_v1 = vadd.f32 %v389_v58, %v306_v62  ;;  %v377_v2 = vpop.f32.mrb[1].mxu1  ;;  %v404_v7 = vadd.f32 %v393_v6, %v375_v61 }
 0x111   :  { %v406_v3 = vmul.f32 0.5, %v402_v60  ;;  %v405_v5 = vadd.f32 %v397_v63, %v377_v2 }
 0x112   :  { %v412_v4 = vmul.f32 0.5, %v403_v1  ;;  %v419_v8 = vmul.f32 0.5, %v404_v7 }
 0x113   :  { %504 = vtanh.f32 %v406_v3 }
 0x114   :  { %506 = vtanh.f32 %v412_v4 }
 0x115   :  { %508 = vtanh.f32 %v405_v5 }
 0x116   :  { %510 = vtanh.f32 %v419_v8 }
 0x11d   :  { %v505_v9 = vpop.eup %504 }
 0x11e   :  { %v408_v10 = vmul.f32 0.5, %v505_v9  ;;  %v507_v11 = vpop.eup %506 }
 0x11f   :  { %v414_v13 = vmul.f32 0.5, %v507_v11  ;;  %v509_v14 = vpop.eup %508 }
 0x120   :  { %v409_v12 = vadd.f32 0.5, %v408_v10 }
 0x121   :  { %v415_v16 = vadd.f32 0.5, %v414_v13 }
 0x122   :  { %v411_v17 = vmul.f32 %v509_v14, %v409_v12 }
 0x123   :  { %v417_v18 = vmul.f32 %v416_v15, %v415_v16 }
 0x125   :  { %v418_v19 = vadd.f32 %v417_v18, %v411_v17 }
 0x127   :  { %426 = vst [vmem:[#allocation8] sm:$0xff] %v418_v19  ;;  %512 = vtanh.f32 %v418_v19 }
 0x128   :  { %569 = shalt.err (!%p566_p6)
}
 0x129   :  { %s570_s2 = scalar_lea.hbm %s732_s7, 128 }
 0x12a   :  { %p571_p7 = scmp.ne.s32.totalorder %s732_s7, %s570_s2  ;;  %p574_p8 = scmp.lt.u32.totalorder %s570_s2, %s732_s7 }
 0x12c   :  { %p576_p9 = pnand %p574_p8, %p571_p7 }
 0x12e   :  { %579 = shalt.err (!%p576_p9)
}
 0x12f   :  { %446 = dma.vmem_to_hbm [thread:$0]  %s444_s8, 128, %s732_s7, [#allocation9]   ;;  %v511_v20 = vpop.eup %510 }
 0x130   :  { %v421_v21 = vmul.f32 0.5, %v511_v20  ;;  %s616_s18 = smov [#allocation7]  }
 0x131   :  { %s433_s19 = sshll.u32 %s616_s18, 4  ;;  %v513_v23 = vpop.eup %512  ;;  %s434_s19 = int_to_ptr.vmem [resolvable:$true] %s433_s19 }
 0x132   :  { %v422_v22 = vadd.f32 0.5, %v421_v21  ;;  %s580_s20 = scalar_lea.vmem %s434_s19, 128  ;;  %p585_p11 = scmp.lt.s32.totalorder %s434_s19, %s434_s19 }
 0x133   :  { %p581_p10 = scmp.ne.s32.totalorder %s434_s19, %s580_s20  ;;  %p586_p12 = scmp.lt.s32.totalorder %s580_s20, %s580_s20 }
 0x134   :  { %v424_v24 = vmul.f32 %v513_v23, %v422_v22 }
 0x135   :  { %p587_p13 = por %p586_p12, %p585_p11 }
 0x136   :  { %425 = vst [vmem:[#allocation7] sm:$0xff] %v424_v24 }
 0x137   :  { %p588_p0 = pnand %p587_p13, %p581_p10 }
 0x139   :  { %591 = shalt.err (!%p588_p0)
}
 0x13a   :  { %s592_s7 = scalar_lea.hbm %s731_s6, 128 }
 0x13b   :  { %p593_p1 = scmp.ne.s32.totalorder %s731_s6, %s592_s7  ;;  %p596_p2 = scmp.lt.u32.totalorder %s592_s7, %s731_s6 }
 0x13d   :  { %p598_p3 = pnand %p596_p2, %p593_p1 }
 0x13f   :  { %601 = shalt.err (!%p598_p3)
}
 0x140   :  { %436 = dma.vmem_to_hbm [thread:$0]  %s434_s19, 128, %s731_s6, [#allocation4]  }
 0x141   :  { %606 = dma.done.wait [#allocation4], 128  }
 0x142   :  { %607 = vsyncadd [#allocation4], 4294967168 }
 0x143   :  { %608 = dma.done.wait [#allocation9], 128  }
 0x144   :  { %609 = vsyncadd [#allocation9], 4294967168 }
 0x145   :  { %453 = vsyncpa [#allocation3], 1 }
 0x146   :  { %454 = vsyncpa [#allocation6], 1 }
 0x147   :  { %455 = vsyncpa [#allocation4], 1 }
 0x148   :  { %456 = vsyncpa [#allocation9], 1 }

</bundles_post_ra>
